<compile_context>
chip_gen: v7x
topology: tpu7x:2x2x1
jax: 0.10.0
libtpu: 0.0.40
codegen_flags: <defaults>
</compile_context>

<pallas_src>
import functools

import jax
import jax.numpy as jnp
from jax.experimental import pallas as pl
from jax.experimental.pallas import tpu as pltpu

NUM_FEATURES = 512   # resnet18 base.num_features
HID1 = 512
HID2 = 256
NUM_CLASSES = 2
OUT_PAD = 128        # lane-dense padded output width
BN_EPS = 1e-5


# ----------------------------------------------------------------------------
# Kernel: fused 3-layer MLP head on a TM-row batch tile.
# ----------------------------------------------------------------------------
def head_kernel(x_ref, w1_ref, b1_ref, w2_ref, b2_ref, w3_ref, b3_ref, o_ref):
    x = x_ref[...]                                               # [TM, 512] bf16

    # Linear(512,512) + folded BN + ReLU   (Dropout(0.5) = identity at eval)
    # f32 MXU accumulation; bias + ReLU epilogue in bf16 (packed VALU path).
    h1 = jnp.dot(x, w1_ref[...], preferred_element_type=jnp.float32)
    h1 = jnp.maximum(h1.astype(jnp.bfloat16) + b1_ref[...], 0.0)  # [TM,512] bf16

    # Linear(512,256) + folded BN + ReLU   (Dropout(0.3) = identity at eval)
    h2 = jnp.dot(h1, w2_ref[...], preferred_element_type=jnp.float32)
    h2 = jnp.maximum(h2.astype(jnp.bfloat16) + b2_ref[...], 0.0)  # [TM,256] bf16

    # Final Linear(256, 2) padded to 128 lanes (unmasked, lane-dense store).
    # Bias add in f32, store bf16 (halves the mostly-padding writeback DMA).
    logits = (jnp.dot(h2, w3_ref[...], preferred_element_type=jnp.float32)
              + b3_ref[...])                                      # [TM,128] f32
    o_ref[...] = logits.astype(jnp.bfloat16)


# ----------------------------------------------------------------------------
# Parameters (synthetic, deterministic) + offline folding.
# ----------------------------------------------------------------------------
def init_params(key):
    """PyTorch-module-shaped parameters, incl. nontrivial BN running stats."""
    k1, k2, k3, k4, k5, k6, k7, k8 = jax.random.split(key, 8)

    def lin(kw, kb, fan_in, fan_out):
        w = jax.random.normal(kw, (fan_in, fan_out), jnp.float32) / jnp.sqrt(fan_in)
        b = jax.random.normal(kb, (1, fan_out), jnp.float32) * 0.01
        return w, b

    def bn(k, dim):
        kg, kb, km, kv = jax.random.split(k, 4)
        gamma = 1.0 + 0.1 * jax.random.normal(kg, (1, dim), jnp.float32)
        beta = 0.1 * jax.random.normal(kb, (1, dim), jnp.float32)
        mean = 0.1 * jax.random.normal(km, (1, dim), jnp.float32)
        var = 1.0 + 0.1 * jax.random.uniform(kv, (1, dim), jnp.float32)
        scale = gamma / jnp.sqrt(var + BN_EPS)
        shift = beta - mean * scale
        return scale, shift

    w1, b1 = lin(k1, k2, NUM_FEATURES, HID1)
    w2, b2 = lin(k3, k4, HID1, HID2)
    w3, b3 = lin(k5, k6, HID2, NUM_CLASSES)
    s1, t1 = bn(k7, HID1)
    s2, t2 = bn(k8, HID2)
    return dict(w1=w1, b1=b1, s1=s1, t1=t1,
                w2=w2, b2=b2, s2=s2, t2=t2,
                w3=w3, b3=b3)


def fold_params(p):
    """Fold eval-mode BatchNorm into the Linear layers, cast weights (and the
    intermediate-layer biases, used by the bf16 epilogue) to bf16, and pad the
    final layer to a 128-lane output."""
    w1 = (p["w1"] * p["s1"]).astype(jnp.bfloat16)                  # [512, 512]
    b1 = (p["b1"] * p["s1"] + p["t1"]).astype(jnp.bfloat16)        # [1, 512]
    w2 = (p["w2"] * p["s2"]).astype(jnp.bfloat16)                  # [512, 256]
    b2 = (p["b2"] * p["s2"] + p["t2"]).astype(jnp.bfloat16)        # [1, 256]
    w3 = jnp.zeros((HID2, OUT_PAD), jnp.float32)
    w3 = w3.at[:, :NUM_CLASSES].set(p["w3"]).astype(jnp.bfloat16)  # [256, 128]
    b3 = jnp.zeros((1, OUT_PAD), jnp.float32)
    b3 = b3.at[:, :NUM_CLASSES].set(p["b3"])                       # [1, 128] f32
    return dict(w1=w1, b1=b1, w2=w2, b2=b2, w3=w3, b3=b3)


# ----------------------------------------------------------------------------
# Wrapper
# ----------------------------------------------------------------------------
def _round_up(x, m):
    return ((x + m - 1) // m) * m


def _pick_tm(n):
    """Batch-tile rows:
      * >= 16 (bf16 packed-sublane tile; never the old TM=8),
      * aligned to 128 (v5e 4x128 MXU) and to 256 once >= 256 (v6e/v7x 256x256),
      * capped at 1024 (amortizes ~0.35us/step grid overhead; VMEM << budget),
      * at least 2 grid steps when the batch allows, so the "parallel" axis
        can shard across v7x's two TensorCores.
    """
    if n <= 32:
        return _round_up(max(n, 1), 16)
    tm = _round_up(pl.cdiv(n, 2), 16)      # aim for >= 2 tiles
    if tm > 128:
        tm = _round_up(tm, 128)
    if tm > 256:
        tm = _round_up(tm, 256)
    return min(tm, 1024)


@functools.partial(jax.jit, static_argnames=())
def binary_classifier_head(feats_nchw, folded):
    """feats_nchw: backbone feature maps, PyTorch layout [N, C, H, W]."""
    n, c, _, _ = feats_nchw.shape
    assert c == NUM_FEATURES

    # AdaptiveAvgPool2d(1) + Flatten in plain XLA (no transpose copy, tiny
    # kernel input), then bf16 for native-rate MXU matmuls.
    # TODO(synk): this pool reads ~49x more HBM than the kernel consumes; the
    # real end-to-end win is emitting bf16 feature maps / fusing the pool into
    # the backbone's last conv, which is out of scope here.
    pooled = jnp.mean(feats_nchw, axis=(2, 3)).astype(jnp.bfloat16)   # [N, 512]

    tm = _pick_tm(n)
    n_pad = pl.cdiv(n, tm) * tm
    if n_pad != n:
        pooled = jnp.pad(pooled, ((0, n_pad - n), (0, 0)))

    grid = (n_pad // tm,)
    out = pl.pallas_call(
        head_kernel,
        out_shape=jax.ShapeDtypeStruct((n_pad, OUT_PAD), jnp.bfloat16),
        grid=grid,
        in_specs=[
            pl.BlockSpec((tm, NUM_FEATURES), lambda i: (i, 0)),    # streaming x
            pl.BlockSpec((NUM_FEATURES, HID1), lambda i: (0, 0)),  # resident w1
            pl.BlockSpec((1, HID1), lambda i: (0, 0)),             # resident b1
            pl.BlockSpec((HID1, HID2), lambda i: (0, 0)),          # resident w2
            pl.BlockSpec((1, HID2), lambda i: (0, 0)),             # resident b2
            pl.BlockSpec((HID2, OUT_PAD), lambda i: (0, 0)),       # resident w3
            pl.BlockSpec((1, OUT_PAD), lambda i: (0, 0)),          # resident b3
        ],
        out_specs=pl.BlockSpec((tm, OUT_PAD), lambda i: (i, 0)),
        compiler_params=pltpu.CompilerParams(
            dimension_semantics=("parallel",),
            vmem_limit_bytes=32 * 1024 * 1024),
    )(pooled, folded["w1"], folded["b1"], folded["w2"], folded["b2"],
      folded["w3"], folded["b3"])

    return out[:n, :NUM_CLASSES]


# ----------------------------------------------------------------------------
# Pure-JAX f32 reference (unfolded params, exact eval-mode module semantics).
# ----------------------------------------------------------------------------
def reference_head(feats_nchw, p):
    pooled = jnp.mean(feats_nchw, axis=(2, 3))                    # [N, 512]
    h1 = pooled @ p["w1"] + p["b1"]
    h1 = jnp.maximum(h1 * p["s1"] + p["t1"], 0.0)
    h2 = h1 @ p["w2"] + p["b2"]
    h2 = jnp.maximum(h2 * p["s2"] + p["t2"], 0.0)
    return h2 @ p["w3"] + p["b3"]


if __name__ == "__main__":
    key = jax.random.PRNGKey(0)
    k_feat1, k_feat2, k_param = jax.random.split(key, 3)

    params = init_params(k_param)
    folded = fold_params(params)

    # Small synthetic backbone feature maps (resnet18 forward_features shape
    # for 224x224 input is [N, 512, 7, 7]).
    #   n=8  -> single 16-row tile (padded batch rows)
    #   n=40 -> 2 grid steps (exercises the >=2-tile / megacore path) + pad
    for k_feat, n in ((k_feat1, 8), (k_feat2, 40)):
        feats = jax.random.normal(k_feat, (n, NUM_FEATURES, 7, 7), jnp.float32)
        logits = jax.block_until_ready(binary_classifier_head(feats, folded))
        ref = reference_head(feats, params)
        assert logits.shape == (n, NUM_CLASSES)
        # bf16 weights / activations / output vs f32 reference -> modest tol.
        assert jnp.allclose(logits.astype(jnp.float32), ref,
                            atol=5e-2, rtol=5e-2), (
            float(jnp.max(jnp.abs(logits.astype(jnp.float32) - ref))))

    print("KERNEL_OK")
</pallas_src>

<mosaic_0001>
module attributes {stable_mosaic.version = 11 : i64} {
  func.func @head_kernel(%arg0: i32, %arg1: memref<16x512xbf16, #tpu.memory_space<vmem>>, %arg2: memref<512x512xbf16, #tpu.memory_space<vmem>>, %arg3: memref<1x512xbf16, #tpu.memory_space<vmem>>, %arg4: memref<512x256xbf16, #tpu.memory_space<vmem>>, %arg5: memref<1x256xbf16, #tpu.memory_space<vmem>>, %arg6: memref<256x128xbf16, #tpu.memory_space<vmem>>, %arg7: memref<1x128xf32, #tpu.memory_space<vmem>>, %arg8: memref<16x128xbf16, #tpu.memory_space<vmem>>) attributes {dimension_semantics = [#tpu.dimension_semantics<parallel>], iteration_bounds = array<i64: 1>, scalar_prefetch = 0 : i64, scratch_operands = 0 : i64, tpu.core_type = #tpu.core_type<tc>, window_params = [{transform_indices = @transform_0, window_bounds = array<i64: 16, 512>}, {pipeline_mode = #tpu.pipeline_mode<synchronous>, transform_indices = @transform_1, window_bounds = array<i64: 512, 512>}, {pipeline_mode = #tpu.pipeline_mode<synchronous>, transform_indices = @transform_2, window_bounds = array<i64: 1, 512>}, {pipeline_mode = #tpu.pipeline_mode<synchronous>, transform_indices = @transform_3, window_bounds = array<i64: 512, 256>}, {pipeline_mode = #tpu.pipeline_mode<synchronous>, transform_indices = @transform_4, window_bounds = array<i64: 1, 256>}, {pipeline_mode = #tpu.pipeline_mode<synchronous>, transform_indices = @transform_5, window_bounds = array<i64: 256, 128>}, {pipeline_mode = #tpu.pipeline_mode<synchronous>, transform_indices = @transform_6, window_bounds = array<i64: 1, 128>}, {transform_indices = @transform_7, window_bounds = array<i64: 16, 128>}]} {
    %c0 = arith.constant 0 : index
    %c0_0 = arith.constant 0 : index
    %0 = vector.load %arg1[%c0, %c0_0] : memref<16x512xbf16, #tpu.memory_space<vmem>>, vector<16x512xbf16>
    %c0_1 = arith.constant 0 : index
    %c0_2 = arith.constant 0 : index
    %1 = vector.load %arg2[%c0_1, %c0_2] : memref<512x512xbf16, #tpu.memory_space<vmem>>, vector<512x512xbf16>
    %cst = arith.constant dense<0.000000e+00> : vector<16x512xf32>
    %2 = tpu.matmul %0, %1, %cst {dimension_numbers = #tpu.dot_dimension_numbers<[1], [0], [0], [1], [0, 0, 1, 1], [], []>} : vector<16x512xbf16>, vector<512x512xbf16>, vector<16x512xf32> -> vector<16x512xf32>
    %3 = arith.truncf %2 : vector<16x512xf32> to vector<16x512xbf16>
    %c0_3 = arith.constant 0 : index
    %c0_4 = arith.constant 0 : index
    %4 = vector.load %arg3[%c0_3, %c0_4] : memref<1x512xbf16, #tpu.memory_space<vmem>>, vector<1x512xbf16>
    %5 = vector.broadcast %4 : vector<1x512xbf16> to vector<16x512xbf16>
    %6 = arith.addf %3, %5 : vector<16x512xbf16>
    %cst_5 = arith.constant 0.000000e+00 : bf16
    %7 = vector.broadcast %cst_5 : bf16 to vector<16x512xbf16>
    %8 = arith.maximumf %6, %7 : vector<16x512xbf16>
    %c0_6 = arith.constant 0 : index
    %c0_7 = arith.constant 0 : index
    %9 = vector.load %arg4[%c0_6, %c0_7] : memref<512x256xbf16, #tpu.memory_space<vmem>>, vector<512x256xbf16>
    %cst_8 = arith.constant dense<0.000000e+00> : vector<16x256xf32>
    %10 = tpu.matmul %8, %9, %cst_8 {dimension_numbers = #tpu.dot_dimension_numbers<[1], [0], [0], [1], [0, 0, 1, 1], [], []>} : vector<16x512xbf16>, vector<512x256xbf16>, vector<16x256xf32> -> vector<16x256xf32>
    %11 = arith.truncf %10 : vector<16x256xf32> to vector<16x256xbf16>
    %c0_9 = arith.constant 0 : index
    %c0_10 = arith.constant 0 : index
    %12 = vector.load %arg5[%c0_9, %c0_10] : memref<1x256xbf16, #tpu.memory_space<vmem>>, vector<1x256xbf16>
    %13 = vector.broadcast %12 : vector<1x256xbf16> to vector<16x256xbf16>
    %14 = arith.addf %11, %13 : vector<16x256xbf16>
    %cst_11 = arith.constant 0.000000e+00 : bf16
    %15 = vector.broadcast %cst_11 : bf16 to vector<16x256xbf16>
    %16 = arith.maximumf %14, %15 : vector<16x256xbf16>
    %c0_12 = arith.constant 0 : index
    %c0_13 = arith.constant 0 : index
    %17 = vector.load %arg6[%c0_12, %c0_13] : memref<256x128xbf16, #tpu.memory_space<vmem>>, vector<256x128xbf16>
    %cst_14 = arith.constant dense<0.000000e+00> : vector<16x128xf32>
    %18 = tpu.matmul %16, %17, %cst_14 {dimension_numbers = #tpu.dot_dimension_numbers<[1], [0], [0], [1], [0, 0, 1, 1], [], []>} : vector<16x256xbf16>, vector<256x128xbf16>, vector<16x128xf32> -> vector<16x128xf32>
    %c0_15 = arith.constant 0 : index
    %c0_16 = arith.constant 0 : index
    %19 = vector.load %arg7[%c0_15, %c0_16] : memref<1x128xf32, #tpu.memory_space<vmem>>, vector<1x128xf32>
    %20 = vector.broadcast %19 : vector<1x128xf32> to vector<16x128xf32>
    %21 = arith.addf %18, %20 : vector<16x128xf32>
    %22 = arith.truncf %21 : vector<16x128xf32> to vector<16x128xbf16>
    %c0_17 = arith.constant 0 : index
    %c0_18 = arith.constant 0 : index
    %23 = vector.load %arg8[%c0_17, %c0_18] : memref<16x128xbf16, #tpu.memory_space<vmem>>, vector<16x128xbf16>
    tpu.vector_store %arg8[%c0_17, %c0_18], %22 {strides = array<i32>} : memref<16x128xbf16, #tpu.memory_space<vmem>>, vector<16x128xbf16>,
    return
  }
  func.func @transform_0(%arg0: i32) -> (i32, i32) {
    %c0_i32 = arith.constant 0 : i32
    %c0_i32_0 = arith.constant 0 : i32
    return %arg0, %c0_i32 : i32, i32
  }
  func.func @transform_1(%arg0: i32) -> (i32, i32) {
    %c0_i32 = arith.constant 0 : i32
    %c0_i32_0 = arith.constant 0 : i32
    %c0_i32_1 = arith.constant 0 : i32
    return %c0_i32, %c0_i32_0 : i32, i32
  }
  func.func @transform_2(%arg0: i32) -> (i32, i32) {
    %c0_i32 = arith.constant 0 : i32
    %c0_i32_0 = arith.constant 0 : i32
    %c0_i32_1 = arith.constant 0 : i32
    return %c0_i32, %c0_i32_0 : i32, i32
  }
  func.func @transform_3(%arg0: i32) -> (i32, i32) {
    %c0_i32 = arith.constant 0 : i32
    %c0_i32_0 = arith.constant 0 : i32
    %c0_i32_1 = arith.constant 0 : i32
    return %c0_i32, %c0_i32_0 : i32, i32
  }
  func.func @transform_4(%arg0: i32) -> (i32, i32) {
    %c0_i32 = arith.constant 0 : i32
    %c0_i32_0 = arith.constant 0 : i32
    %c0_i32_1 = arith.constant 0 : i32
    return %c0_i32, %c0_i32_0 : i32, i32
  }
  func.func @transform_5(%arg0: i32) -> (i32, i32) {
    %c0_i32 = arith.constant 0 : i32
    %c0_i32_0 = arith.constant 0 : i32
    %c0_i32_1 = arith.constant 0 : i32
    return %c0_i32, %c0_i32_0 : i32, i32
  }
  func.func @transform_6(%arg0: i32) -> (i32, i32) {
    %c0_i32 = arith.constant 0 : i32
    %c0_i32_0 = arith.constant 0 : i32
    %c0_i32_1 = arith.constant 0 : i32
    return %c0_i32, %c0_i32_0 : i32, i32
  }
  func.func @transform_7(%arg0: i32) -> (i32, i32) {
    %c0_i32 = arith.constant 0 : i32
    %c0_i32_0 = arith.constant 0 : i32
    return %arg0, %c0_i32 : i32, i32
  }
}

</mosaic_0001>

<bundles_post_ra>
// kernel: binary_classifier_head.1
= control target key start
LH: loop header
LB: loop body
LE: loop exit
PB: predicated region body
PF: predicated region fallthrough
CT: control target
= control target key end

     0   :  { %s3065_s1 = inlined_call_operand.vmem [shape: bf16[512,512], index: 1, kind: input, shape index: {}]   ;;  %s3066_s0 = inlined_call_operand.vmem [shape: bf16[16,512], index: 0, kind: input, shape index: {}]   ;;  %s3067_s3 = inlined_call_operand.vmem [shape: bf16[512,256], index: 3, kind: input, shape index: {}]   ;;  %s3068_s2 = inlined_call_operand.vmem [shape: bf16[1,512], index: 2, kind: input, shape index: {}]   ;;  %s3069_s5 = inlined_call_operand.vmem [shape: bf16[256,128], index: 5, kind: input, shape index: {}]   ;;  %s3070_s4 = inlined_call_operand.vmem [shape: bf16[1,256], index: 4, kind: input, shape index: {}]   ;;  %s3071_s6 = inlined_call_operand.vmem [shape: f32[1,128], index: 6, kind: input, shape index: {}]   ;;  %s3072_s7 = inlined_call_operand.vmem [shape: bf16[16,128], index: 7, kind: output, shape index: {}]  }
   0x1   :  { %v2021_v0 = vld [vmem:[%s3065_s1 + $0x4] ss:$16 sps:$4 sm:$0xff]   ;;  %v2025_v2 = vld [vmem:[%s3065_s1] ss:$16 sps:$4 sm:$0xff]   ;;  %v2529_v51 = vld [vmem:[%s3066_s0 + $0xc] ss:$16 sps:$4 sm:$0xff]  }
   0x2   :  { %v2023_v1 = vld [vmem:[%s3065_s1 + $0x204] ss:$16 sps:$4 sm:$0xff]   ;;  %819 = vmatprep.subr.bf16.mxu1 %v2021_v0  ;;  %v2026_v3 = vld [vmem:[%s3065_s1 + $0x200] ss:$16 sps:$4 sm:$0xff]   ;;  %894 = vmatprep.mubr.bf16.mxu0 %v2529_v51 }
   0x3   :  { %862 = vmatprep.subr.bf16.mxu0 %v2023_v1  ;;  %v2027_v4 = vld [vmem:[%s3065_s1 + $0x24] ss:$16 sps:$4 sm:$0xff]   ;;  %820 = vmatpush1.bf16.msra.mxu1 %v2025_v2  ;;  %v2031_v6 = vld [vmem:[%s3065_s1 + $0x20] ss:$16 sps:$4 sm:$0xff]   ;;  %v2125_v2 = vld [vmem:[%s3065_s1 + $0xc] ss:$16 sps:$4 sm:$0xff]  }
   0x4   :  { %863 = vmatpush1.bf16.msra.mxu0 %v2026_v3  ;;  %v2029_v5 = vld [vmem:[%s3065_s1 + $0x224] ss:$16 sps:$4 sm:$0xff]   ;;  %821 = vmatprep.subr.bf16.mxu1 %v2027_v4  ;;  %v2032_v7 = vld [vmem:[%s3065_s1 + $0x220] ss:$16 sps:$4 sm:$0xff]   ;;  %v2585_v4 = vld [vmem:[%s3066_s0 + $0x8] ss:$16 sps:$4 sm:$0xff]  }
   0x5   :  { %864 = vmatprep.subr.bf16.mxu0 %v2029_v5  ;;  %v2033_v8 = vld [vmem:[%s3065_s1 + $0x44] ss:$16 sps:$4 sm:$0xff]   ;;  %v2037_v10 = vld [vmem:[%s3065_s1 + $0x40] ss:$16 sps:$4 sm:$0xff]   ;;  %v2123_v5 = vld [vmem:[%s3065_s1 + $0x8] ss:$16 sps:$4 sm:$0xff]  }
   0x6   :  { %v2035_v9 = vld [vmem:[%s3065_s1 + $0x244] ss:$16 sps:$4 sm:$0xff]   ;;  %v2038_v11 = vld [vmem:[%s3065_s1 + $0x240] ss:$16 sps:$4 sm:$0xff]  }
   0x7   :  { %822 = vmatpush1.bf16.msra.mxu1 %v2031_v6  ;;  %v2039_v12 = vld [vmem:[%s3065_s1 + $0x64] ss:$16 sps:$4 sm:$0xff]   ;;  %v2043_v14 = vld [vmem:[%s3065_s1 + $0x60] ss:$16 sps:$4 sm:$0xff]   ;;  %v2128_v6 = vld [vmem:[%s3065_s1 + $0x2c] ss:$16 sps:$4 sm:$0xff]  }
   0x8   :  { %865 = vmatpush1.bf16.msra.mxu0 %v2032_v7  ;;  %823 = vmatprep.subr.bf16.mxu1 %v2033_v8  ;;  %v2041_v13 = vld [vmem:[%s3065_s1 + $0x264] ss:$16 sps:$4 sm:$0xff]   ;;  %v2044_v15 = vld [vmem:[%s3065_s1 + $0x260] ss:$16 sps:$4 sm:$0xff]   ;;  %v2126_v7 = vld [vmem:[%s3065_s1 + $0x28] ss:$16 sps:$4 sm:$0xff]  }
   0x9   :  { %866 = vmatprep.subr.bf16.mxu0 %v2035_v9  ;;  %v2045_v16 = vld [vmem:[%s3065_s1 + $0x84] ss:$16 sps:$4 sm:$0xff]   ;;  %v2049_v18 = vld [vmem:[%s3065_s1 + $0x80] ss:$16 sps:$4 sm:$0xff]   ;;  %v2131_v8 = vld [vmem:[%s3065_s1 + $0x4c] ss:$16 sps:$4 sm:$0xff]  }
   0xa   :  { %v2047_v17 = vld [vmem:[%s3065_s1 + $0x284] ss:$16 sps:$4 sm:$0xff]   ;;  %v2050_v19 = vld [vmem:[%s3065_s1 + $0x280] ss:$16 sps:$4 sm:$0xff]   ;;  %v2129_v9 = vld [vmem:[%s3065_s1 + $0x48] ss:$16 sps:$4 sm:$0xff]  }
   0xb   :  { %824 = vmatpush1.bf16.msra.mxu1 %v2037_v10  ;;  %v2051_v20 = vld [vmem:[%s3065_s1 + $0xa4] ss:$16 sps:$4 sm:$0xff]   ;;  %v2055_v22 = vld [vmem:[%s3065_s1 + $0xa0] ss:$16 sps:$4 sm:$0xff]   ;;  %v2134_v10 = vld [vmem:[%s3065_s1 + $0x6c] ss:$16 sps:$4 sm:$0xff]  }
   0xc   :  { %867 = vmatpush1.bf16.msra.mxu0 %v2038_v11  ;;  %825 = vmatprep.subr.bf16.mxu1 %v2039_v12  ;;  %v2053_v21 = vld [vmem:[%s3065_s1 + $0x2a4] ss:$16 sps:$4 sm:$0xff]   ;;  %v2056_v23 = vld [vmem:[%s3065_s1 + $0x2a0] ss:$16 sps:$4 sm:$0xff]   ;;  %v2132_v11 = vld [vmem:[%s3065_s1 + $0x68] ss:$16 sps:$4 sm:$0xff]  }
   0xd   :  { %868 = vmatprep.subr.bf16.mxu0 %v2041_v13  ;;  %v2057_v24 = vld [vmem:[%s3065_s1 + $0xc4] ss:$16 sps:$4 sm:$0xff]   ;;  %v2061_v26 = vld [vmem:[%s3065_s1 + $0xc0] ss:$16 sps:$4 sm:$0xff]   ;;  %v2137_v12 = vld [vmem:[%s3065_s1 + $0x8c] ss:$16 sps:$4 sm:$0xff]  }
   0xe   :  { %v2059_v25 = vld [vmem:[%s3065_s1 + $0x2c4] ss:$16 sps:$4 sm:$0xff]   ;;  %v2062_v27 = vld [vmem:[%s3065_s1 + $0x2c0] ss:$16 sps:$4 sm:$0xff]   ;;  %v2135_v13 = vld [vmem:[%s3065_s1 + $0x88] ss:$16 sps:$4 sm:$0xff]  }
   0xf   :  { %826 = vmatpush1.bf16.msra.mxu1 %v2043_v14  ;;  %v2063_v28 = vld [vmem:[%s3065_s1 + $0xe4] ss:$16 sps:$4 sm:$0xff]   ;;  %v2067_v30 = vld [vmem:[%s3065_s1 + $0xe0] ss:$16 sps:$4 sm:$0xff]   ;;  %v2140_v14 = vld [vmem:[%s3065_s1 + $0xac] ss:$16 sps:$4 sm:$0xff]  }
  0x10   :  { %869 = vmatpush1.bf16.msra.mxu0 %v2044_v15  ;;  %827 = vmatprep.subr.bf16.mxu1 %v2045_v16  ;;  %v2065_v29 = vld [vmem:[%s3065_s1 + $0x2e4] ss:$16 sps:$4 sm:$0xff]   ;;  %v2068_v31 = vld [vmem:[%s3065_s1 + $0x2e0] ss:$16 sps:$4 sm:$0xff]   ;;  %v2138_v15 = vld [vmem:[%s3065_s1 + $0xa8] ss:$16 sps:$4 sm:$0xff]  }
  0x11   :  { %870 = vmatprep.subr.bf16.mxu0 %v2047_v17  ;;  %v2069_v32 = vld [vmem:[%s3065_s1 + $0x104] ss:$16 sps:$4 sm:$0xff]   ;;  %v2073_v34 = vld [vmem:[%s3065_s1 + $0x100] ss:$16 sps:$4 sm:$0xff]   ;;  %v2143_v16 = vld [vmem:[%s3065_s1 + $0xcc] ss:$16 sps:$4 sm:$0xff]  }
  0x12   :  { %v2071_v33 = vld [vmem:[%s3065_s1 + $0x304] ss:$16 sps:$4 sm:$0xff]   ;;  %v2074_v35 = vld [vmem:[%s3065_s1 + $0x300] ss:$16 sps:$4 sm:$0xff]   ;;  %v2141_v17 = vld [vmem:[%s3065_s1 + $0xc8] ss:$16 sps:$4 sm:$0xff]  }
  0x13   :  { %828 = vmatpush1.bf16.msra.mxu1 %v2049_v18  ;;  %v2075_v36 = vld [vmem:[%s3065_s1 + $0x124] ss:$16 sps:$4 sm:$0xff]   ;;  %v2079_v38 = vld [vmem:[%s3065_s1 + $0x120] ss:$16 sps:$4 sm:$0xff]   ;;  %v2146_v18 = vld [vmem:[%s3065_s1 + $0xec] ss:$16 sps:$4 sm:$0xff]  }
  0x14   :  { %871 = vmatpush1.bf16.msra.mxu0 %v2050_v19  ;;  %829 = vmatprep.subr.bf16.mxu1 %v2051_v20  ;;  %v2077_v37 = vld [vmem:[%s3065_s1 + $0x324] ss:$16 sps:$4 sm:$0xff]   ;;  %v2080_v39 = vld [vmem:[%s3065_s1 + $0x320] ss:$16 sps:$4 sm:$0xff]  }
  0x15   :  { %872 = vmatprep.subr.bf16.mxu0 %v2053_v21  ;;  %v2081_v40 = vld [vmem:[%s3065_s1 + $0x144] ss:$16 sps:$4 sm:$0xff]   ;;  %v2085_v42 = vld [vmem:[%s3065_s1 + $0x140] ss:$16 sps:$4 sm:$0xff]  }
  0x16   :  { %v2083_v41 = vld [vmem:[%s3065_s1 + $0x344] ss:$16 sps:$4 sm:$0xff]   ;;  %v2086_v43 = vld [vmem:[%s3065_s1 + $0x340] ss:$16 sps:$4 sm:$0xff]  }
  0x17   :  { %830 = vmatpush1.bf16.msra.mxu1 %v2055_v22  ;;  %v2087_v44 = vld [vmem:[%s3065_s1 + $0x164] ss:$16 sps:$4 sm:$0xff]   ;;  %v2091_v46 = vld [vmem:[%s3065_s1 + $0x160] ss:$16 sps:$4 sm:$0xff]   ;;  %v2144_v22 = vld [vmem:[%s3065_s1 + $0xe8] ss:$16 sps:$4 sm:$0xff]  }
  0x18   :  { %873 = vmatpush1.bf16.msra.mxu0 %v2056_v23  ;;  %831 = vmatprep.subr.bf16.mxu1 %v2057_v24  ;;  %v2089_v45 = vld [vmem:[%s3065_s1 + $0x364] ss:$16 sps:$4 sm:$0xff]   ;;  %v2092_v47 = vld [vmem:[%s3065_s1 + $0x360] ss:$16 sps:$4 sm:$0xff]   ;;  %v2149_v23 = vld [vmem:[%s3065_s1 + $0x10c] ss:$16 sps:$4 sm:$0xff]  }
  0x19   :  { %874 = vmatprep.subr.bf16.mxu0 %v2059_v25  ;;  %v2093_v48 = vld [vmem:[%s3065_s1 + $0x184] ss:$16 sps:$4 sm:$0xff]   ;;  %v2097_v52 = vld [vmem:[%s3065_s1 + $0x180] ss:$16 sps:$4 sm:$0xff]  }
  0x1a   :  { %v2119_v49 = vld [vmem:[%s3066_s0 + $0x4] ss:$16 sps:$4 sm:$0xff]   ;;  %v2098_v53 = vld [vmem:[%s3065_s1 + $0x380] ss:$16 sps:$4 sm:$0xff]  }
  0x1b   :  { %832 = vmatpush1.bf16.msra.mxu1 %v2061_v26  ;;  %v2095_v50 = vld [vmem:[%s3065_s1 + $0x384] ss:$16 sps:$4 sm:$0xff]   ;;  %851 = vmatprep.mubr.bf16.mxu1 %v2119_v49  ;;  %v2103_v56 = vld [vmem:[%s3065_s1 + $0x1a0] ss:$16 sps:$4 sm:$0xff]   ;;  %v2147_v26 = vld [vmem:[%s3065_s1 + $0x108] ss:$16 sps:$4 sm:$0xff]  }
  0x1c   :  { %875 = vmatpush1.bf16.msra.mxu0 %v2062_v27  ;;  %833 = vmatprep.subr.bf16.mxu1 %v2063_v28  ;;  %v2099_v54 = vld [vmem:[%s3065_s1 + $0x1a4] ss:$16 sps:$4 sm:$0xff]   ;;  %v2104_v57 = vld [vmem:[%s3065_s1 + $0x3a0] ss:$16 sps:$4 sm:$0xff]   ;;  %v2152_v27 = vld [vmem:[%s3065_s1 + $0x12c] ss:$16 sps:$4 sm:$0xff]  }
  0x1d   :  { %876 = vmatprep.subr.bf16.mxu0 %v2065_v29  ;;  %v2101_v55 = vld [vmem:[%s3065_s1 + $0x3a4] ss:$16 sps:$4 sm:$0xff]   ;;  %v2109_v60 = vld [vmem:[%s3065_s1 + $0x1c0] ss:$16 sps:$4 sm:$0xff]  }
  0x1e   :  { %v2105_v58 = vld [vmem:[%s3065_s1 + $0x1c4] ss:$16 sps:$4 sm:$0xff]   ;;  %v2110_v61 = vld [vmem:[%s3065_s1 + $0x3c0] ss:$16 sps:$4 sm:$0xff]  }
  0x1f   :  { %834 = vmatpush1.bf16.msra.mxu1 %v2067_v30  ;;  %v2107_v59 = vld [vmem:[%s3065_s1 + $0x3c4] ss:$16 sps:$4 sm:$0xff]   ;;  %v2115_v0 = vld [vmem:[%s3065_s1 + $0x1e0] ss:$16 sps:$4 sm:$0xff]   ;;  %v2150_v30 = vld [vmem:[%s3065_s1 + $0x128] ss:$16 sps:$4 sm:$0xff]  }
  0x20   :  { %877 = vmatpush1.bf16.msra.mxu0 %v2068_v31  ;;  %835 = vmatprep.subr.bf16.mxu1 %v2069_v32  ;;  %v2111_v62 = vld [vmem:[%s3065_s1 + $0x1e4] ss:$16 sps:$4 sm:$0xff]   ;;  %v2116_v1 = vld [vmem:[%s3065_s1 + $0x3e0] ss:$16 sps:$4 sm:$0xff]   ;;  %v2155_v31 = vld [vmem:[%s3065_s1 + $0x14c] ss:$16 sps:$4 sm:$0xff]  }
  0x21   :  { %878 = vmatprep.subr.bf16.mxu0 %v2071_v33  ;;  %v2113_v63 = vld [vmem:[%s3065_s1 + $0x3e4] ss:$16 sps:$4 sm:$0xff]   ;;  %v2580_v3 = vld [vmem:[%s3066_s0] ss:$16 sps:$4 sm:$0xff]  }
  0x22   :  { %v2219_v19 = vld [vmem:[%s3067_s3] ss:$8 sps:$4 sm:$0xff]   ;;  %v2221_v20 = vld [vmem:[%s3067_s3 + $0x4] ss:$8 sps:$4 sm:$0xff]   ;;  %v2224_v21 = vld [vmem:[%s3067_s3 + $0x14] ss:$8 sps:$4 sm:$0xff]  }
  0x23   :  { %836 = vmatpush1.bf16.msra.mxu1 %v2073_v34  ;;  %v2222_v24 = vld [vmem:[%s3067_s3 + $0x10] ss:$8 sps:$4 sm:$0xff]   ;;  %v2227_v25 = vld [vmem:[%s3067_s3 + $0x24] ss:$8 sps:$4 sm:$0xff]   ;;  %v2225_v28 = vld [vmem:[%s3067_s3 + $0x20] ss:$8 sps:$4 sm:$0xff]  }
  0x24   :  { %879 = vmatpush1.bf16.msra.mxu0 %v2074_v35  ;;  %837 = vmatprep.subr.bf16.mxu1 %v2075_v36  ;;  %v2230_v29 = vld [vmem:[%s3067_s3 + $0x34] ss:$8 sps:$4 sm:$0xff]   ;;  %v2228_v32 = vld [vmem:[%s3067_s3 + $0x30] ss:$8 sps:$4 sm:$0xff]   ;;  %v2233_v33 = vld [vmem:[%s3067_s3 + $0x44] ss:$8 sps:$4 sm:$0xff]  }
  0x25   :  { %880 = vmatprep.subr.bf16.mxu0 %v2077_v37  ;;  %v2153_v34 = vld [vmem:[%s3065_s1 + $0x148] ss:$16 sps:$4 sm:$0xff]   ;;  %v2158_v35 = vld [vmem:[%s3065_s1 + $0x16c] ss:$16 sps:$4 sm:$0xff]  }
  0x26   :  { %v2231_v36 = vld [vmem:[%s3067_s3 + $0x40] ss:$8 sps:$4 sm:$0xff]   ;;  %v2236_v37 = vld [vmem:[%s3067_s3 + $0x54] ss:$8 sps:$4 sm:$0xff]  }
  0x27   :  { %838 = vmatpush1.bf16.msra.mxu1 %v2079_v38  ;;  %v2156_v38 = vld [vmem:[%s3065_s1 + $0x168] ss:$16 sps:$4 sm:$0xff]  }
  0x28   :  { %881 = vmatpush1.bf16.msra.mxu0 %v2080_v39  ;;  %839 = vmatprep.subr.bf16.mxu1 %v2081_v40  ;;  %v2234_v39 = vld [vmem:[%s3067_s3 + $0x50] ss:$8 sps:$4 sm:$0xff]   ;;  %v2161_v40 = vld [vmem:[%s3065_s1 + $0x18c] ss:$16 sps:$4 sm:$0xff]  }
  0x29   :  { %882 = vmatprep.subr.bf16.mxu0 %v2083_v41  ;;  %v2239_v41 = vld [vmem:[%s3067_s3 + $0x64] ss:$8 sps:$4 sm:$0xff]  }
  0x2b   :  { %840 = vmatpush1.bf16.msra.mxu1 %v2085_v42  ;;  %v2159_v42 = vld [vmem:[%s3065_s1 + $0x188] ss:$16 sps:$4 sm:$0xff]  }
  0x2c   :  { %883 = vmatpush1.bf16.msra.mxu0 %v2086_v43  ;;  %841 = vmatprep.subr.bf16.mxu1 %v2087_v44  ;;  %v2237_v43 = vld [vmem:[%s3067_s3 + $0x60] ss:$8 sps:$4 sm:$0xff]   ;;  %v2164_v44 = vld [vmem:[%s3065_s1 + $0x1ac] ss:$16 sps:$4 sm:$0xff]  }
  0x2d   :  { %884 = vmatprep.subr.bf16.mxu0 %v2089_v45  ;;  %v2242_v45 = vld [vmem:[%s3067_s3 + $0x74] ss:$8 sps:$4 sm:$0xff]  }
  0x2f   :  { %842 = vmatpush1.bf16.msra.mxu1 %v2091_v46  ;;  %v2162_v46 = vld [vmem:[%s3065_s1 + $0x1a8] ss:$16 sps:$4 sm:$0xff]  }
  0x30   :  { %885 = vmatpush1.bf16.msra.mxu0 %v2092_v47  ;;  %843 = vmatprep.subr.bf16.mxu1 %v2093_v48  ;;  %v2240_v47 = vld [vmem:[%s3067_s3 + $0x70] ss:$8 sps:$4 sm:$0xff]   ;;  %v2167_v48 = vld [vmem:[%s3065_s1 + $0x1cc] ss:$16 sps:$4 sm:$0xff]  }
  0x31   :  { %886 = vmatprep.subr.bf16.mxu0 %v2095_v50  ;;  %v2165_v50 = vld [vmem:[%s3065_s1 + $0x1c8] ss:$16 sps:$4 sm:$0xff]  }
  0x33   :  { %844 = vmatpush1.bf16.msra.mxu1 %v2097_v52  ;;  %v2243_v52 = vld [vmem:[%s3067_s3 + $0x80] ss:$8 sps:$4 sm:$0xff]  }
  0x34   :  { %887 = vmatpush1.bf16.msra.mxu0 %v2098_v53  ;;  %845 = vmatprep.subr.bf16.mxu1 %v2099_v54  ;;  %v2170_v53 = vld [vmem:[%s3065_s1 + $0x1ec] ss:$16 sps:$4 sm:$0xff]  }
  0x35   :  { %888 = vmatprep.subr.bf16.mxu0 %v2101_v55  ;;  %v2248_v54 = vld [vmem:[%s3067_s3 + $0x94] ss:$8 sps:$4 sm:$0xff]   ;;  %v2168_v55 = vld [vmem:[%s3065_s1 + $0x1e8] ss:$16 sps:$4 sm:$0xff]  }
  0x37   :  { %846 = vmatpush1.bf16.msra.mxu1 %v2103_v56  ;;  %v2246_v56 = vld [vmem:[%s3067_s3 + $0x90] ss:$8 sps:$4 sm:$0xff]  }
  0x38   :  { %889 = vmatpush1.bf16.msra.mxu0 %v2104_v57  ;;  %847 = vmatprep.subr.bf16.mxu1 %v2105_v58  ;;  %v2173_v57 = vld [vmem:[%s3065_s1 + $0x20c] ss:$16 sps:$4 sm:$0xff]  }
  0x39   :  { %890 = vmatprep.subr.bf16.mxu0 %v2107_v59  ;;  %v2251_v58 = vld [vmem:[%s3067_s3 + $0xa4] ss:$8 sps:$4 sm:$0xff]   ;;  %v2171_v59 = vld [vmem:[%s3065_s1 + $0x208] ss:$16 sps:$4 sm:$0xff]  }
  0x3b   :  { %848 = vmatpush1.bf16.msra.mxu1 %v2109_v60  ;;  %v2176_v60 = vld [vmem:[%s3065_s1 + $0x22c] ss:$16 sps:$4 sm:$0xff]  }
  0x3c   :  { %891 = vmatpush1.bf16.msra.mxu0 %v2110_v61  ;;  %849 = vmatprep.subr.bf16.mxu1 %v2111_v62  ;;  %v2249_v61 = vld [vmem:[%s3067_s3 + $0xa0] ss:$8 sps:$4 sm:$0xff]   ;;  %v2254_v62 = vld [vmem:[%s3067_s3 + $0xb4] ss:$8 sps:$4 sm:$0xff]  }
  0x3d   :  { %892 = vmatprep.subr.bf16.mxu0 %v2113_v63  ;;  %v2174_v63 = vld [vmem:[%s3065_s1 + $0x228] ss:$16 sps:$4 sm:$0xff]  }
  0x3f   :  { %850 = vmatpush1.bf16.msra.mxu1 %v2115_v0  ;;  %v2179_v0 = vld [vmem:[%s3065_s1 + $0x24c] ss:$16 sps:$4 sm:$0xff]  }
  0x40   :  { %893 = vmatpush1.bf16.msra.mxu0 %v2116_v1  ;;  %905 = vmatprep.subr.bf16.mxu1 %v2125_v2  ;;  %v2252_v1 = vld [vmem:[%s3067_s3 + $0xb0] ss:$8 sps:$4 sm:$0xff]   ;;  %v2257_v2 = vld [vmem:[%s3067_s3 + $0xc4] ss:$8 sps:$4 sm:$0xff]  }
  0x41   :  { %1441 = vmatprep.subr.bf16.mxu0 %v2221_v20  ;;  %v2266_v20 = vld [vmem:[%s3067_s3 + $0xf4] ss:$8 sps:$4 sm:$0xff]  }
  0x42   :  { %852 = vmatmul.mubr.bf16.vlgmr.msra.gmra.mrb[0].mxu1 %v2580_v3 }
  0x43   :  { %895 = vmatmul.mubr.bf16.vlgmr.msra.gmra.mrb[0].mxu0 %v2585_v4  ;;  %906 = vmatpush1.bf16.msra.mxu1 %v2123_v5  ;;  %v2255_v5 = vld [vmem:[%s3067_s3 + $0xc0] ss:$8 sps:$4 sm:$0xff]  }
  0x44   :  { %937 = vmatprep.mubr.bf16.mxu1 %v2119_v49  ;;  %907 = vmatprep.subr.bf16.mxu1 %v2128_v6  ;;  %v2245_v49 = vld [vmem:[%s3067_s3 + $0x84] ss:$8 sps:$4 sm:$0xff]   ;;  %v2180_v6 = vld [vmem:[%s3065_s1 + $0x268] ss:$16 sps:$4 sm:$0xff]  }
  0x45   :  { %1442 = vmatpush1.bf16.msra.mxu0 %v2219_v19  ;;  %v2197_v19 = vld [vmem:[%s3065_s1 + $0x30c] ss:$16 sps:$4 sm:$0xff]  }
  0x46   :  { %1443 = vmatprep.subr.bf16.mxu0 %v2224_v21  ;;  %v2264_v21 = vld [vmem:[%s3067_s3 + $0xf0] ss:$8 sps:$4 sm:$0xff]  }
  0x47   :  { %908 = vmatpush1.bf16.msra.mxu1 %v2126_v7  ;;  %v2185_v7 = vld [vmem:[%s3065_s1 + $0x28c] ss:$16 sps:$4 sm:$0xff]  }
  0x48   :  { %909 = vmatprep.subr.bf16.mxu1 %v2131_v8  ;;  %v2183_v8 = vld [vmem:[%s3065_s1 + $0x288] ss:$16 sps:$4 sm:$0xff]  }
  0x49   :  { %1444 = vmatpush1.bf16.msra.mxu0 %v2222_v24  ;;  %v2269_v24 = vld [vmem:[%s3067_s3 + $0x104] ss:$8 sps:$4 sm:$0xff]  }
  0x4a   :  { %1445 = vmatprep.subr.bf16.mxu0 %v2227_v25  ;;  %v2198_v25 = vld [vmem:[%s3065_s1 + $0x328] ss:$16 sps:$4 sm:$0xff]  }
  0x4b   :  { %910 = vmatpush1.bf16.msra.mxu1 %v2129_v9  ;;  %v2188_v9 = vld [vmem:[%s3065_s1 + $0x2ac] ss:$16 sps:$4 sm:$0xff]  }
  0x4c   :  { %911 = vmatprep.subr.bf16.mxu1 %v2134_v10  ;;  %v2186_v10 = vld [vmem:[%s3065_s1 + $0x2a8] ss:$16 sps:$4 sm:$0xff]  }
  0x4d   :  { %1446 = vmatpush1.bf16.msra.mxu0 %v2225_v28  ;;  %v2206_v28 = vld [vmem:[%s3065_s1 + $0x36c] ss:$16 sps:$4 sm:$0xff]  }
  0x4e   :  { %1447 = vmatprep.subr.bf16.mxu0 %v2230_v29  ;;  %v2204_v29 = vld [vmem:[%s3065_s1 + $0x368] ss:$16 sps:$4 sm:$0xff]  }
  0x4f   :  { %912 = vmatpush1.bf16.msra.mxu1 %v2132_v11  ;;  %v2191_v11 = vld [vmem:[%s3065_s1 + $0x2cc] ss:$16 sps:$4 sm:$0xff]  }
  0x50   :  { %913 = vmatprep.subr.bf16.mxu1 %v2137_v12  ;;  %v2260_v12 = vld [vmem:[%s3067_s3 + $0xd4] ss:$8 sps:$4 sm:$0xff]  }
  0x51   :  { %1448 = vmatpush1.bf16.msra.mxu0 %v2228_v32  ;;  %v2212_v32 = vld [vmem:[%s3065_s1 + $0x3ac] ss:$16 sps:$4 sm:$0xff]  }
  0x52   :  { %1449 = vmatprep.subr.bf16.mxu0 %v2233_v33  ;;  %v2210_v33 = vld [vmem:[%s3065_s1 + $0x3a8] ss:$16 sps:$4 sm:$0xff]  }
  0x53   :  { %914 = vmatpush1.bf16.msra.mxu1 %v2135_v13  ;;  %v2258_v13 = vld [vmem:[%s3067_s3 + $0xd0] ss:$8 sps:$4 sm:$0xff]  }
  0x54   :  { %915 = vmatprep.subr.bf16.mxu1 %v2140_v14  ;;  %v2189_v14 = vld [vmem:[%s3065_s1 + $0x2c8] ss:$16 sps:$4 sm:$0xff]  }
  0x55   :  { %1450 = vmatpush1.bf16.msra.mxu0 %v2231_v36  ;;  %v2218_v36 = vld [vmem:[%s3065_s1 + $0x3ec] ss:$16 sps:$4 sm:$0xff]  }
  0x56   :  { %1451 = vmatprep.subr.bf16.mxu0 %v2236_v37  ;;  %v2216_v37 = vld [vmem:[%s3065_s1 + $0x3e8] ss:$16 sps:$4 sm:$0xff]  }
  0x57   :  { %916 = vmatpush1.bf16.msra.mxu1 %v2138_v15  ;;  %v2194_v15 = vld [vmem:[%s3065_s1 + $0x2ec] ss:$16 sps:$4 sm:$0xff]  }
  0x58   :  { %917 = vmatprep.subr.bf16.mxu1 %v2143_v16  ;;  %v2263_v16 = vld [vmem:[%s3067_s3 + $0xe4] ss:$8 sps:$4 sm:$0xff]  }
  0x59   :  { %1452 = vmatpush1.bf16.msra.mxu0 %v2234_v39 }
  0x5a   :  { %1453 = vmatprep.subr.bf16.mxu0 %v2239_v41 }
  0x5b   :  { %918 = vmatpush1.bf16.msra.mxu1 %v2141_v17  ;;  %v2261_v17 = vld [vmem:[%s3067_s3 + $0xe0] ss:$8 sps:$4 sm:$0xff]  }
  0x5c   :  { %919 = vmatprep.subr.bf16.mxu1 %v2146_v18  ;;  %v2192_v18 = vld [vmem:[%s3065_s1 + $0x2e8] ss:$16 sps:$4 sm:$0xff]  }
  0x5d   :  { %1454 = vmatpush1.bf16.msra.mxu0 %v2237_v43  ;;  %v1893_v43 = vld.sshfl [vmem:[%s3068_s2] sm:$0x33 pattern:$0x75316420] }
  0x5e   :  { %1455 = vmatprep.subr.bf16.mxu0 %v2242_v45  ;;  %v1004_v45 = vcombine.high %v1893_v43, %v1893_v43 }
  0x5f   :  { %920 = vmatpush1.bf16.msra.mxu1 %v2144_v22  ;;  %v2195_v22 = vld [vmem:[%s3065_s1 + $0x308] ss:$16 sps:$4 sm:$0xff]  }
  0x60   :  { %921 = vmatprep.subr.bf16.mxu1 %v2149_v23  ;;  %v2200_v23 = vld [vmem:[%s3065_s1 + $0x32c] ss:$16 sps:$4 sm:$0xff]  }
  0x61   :  { %1456 = vmatpush1.bf16.msra.mxu0 %v2240_v47 }
  0x62   :  { %1457 = vmatprep.subr.bf16.mxu0 %v2245_v49 }
  0x63   :  { %922 = vmatpush1.bf16.msra.mxu1 %v2147_v26  ;;  %v2203_v26 = vld [vmem:[%s3065_s1 + $0x34c] ss:$16 sps:$4 sm:$0xff]  }
  0x64   :  { %923 = vmatprep.subr.bf16.mxu1 %v2152_v27  ;;  %v2201_v27 = vld [vmem:[%s3065_s1 + $0x348] ss:$16 sps:$4 sm:$0xff]  }
  0x65   :  { %1458 = vmatpush1.bf16.msra.mxu0 %v2243_v52 }
  0x66   :  { %1459 = vmatprep.subr.bf16.mxu0 %v2248_v54 }
  0x67   :  { %924 = vmatpush1.bf16.msra.mxu1 %v2150_v30  ;;  %v2209_v30 = vld [vmem:[%s3065_s1 + $0x38c] ss:$16 sps:$4 sm:$0xff]  }
  0x68   :  { %925 = vmatprep.subr.bf16.mxu1 %v2155_v31  ;;  %v2207_v31 = vld [vmem:[%s3065_s1 + $0x388] ss:$16 sps:$4 sm:$0xff]  }
  0x69   :  { %1460 = vmatpush1.bf16.msra.mxu0 %v2246_v56 }
  0x6a   :  { %1461 = vmatprep.subr.bf16.mxu0 %v2251_v58 }
  0x6b   :  { %926 = vmatpush1.bf16.msra.mxu1 %v2153_v34  ;;  %v2215_v34 = vld [vmem:[%s3065_s1 + $0x3cc] ss:$16 sps:$4 sm:$0xff]  }
  0x6c   :  { %927 = vmatprep.subr.bf16.mxu1 %v2158_v35  ;;  %v2213_v35 = vld [vmem:[%s3065_s1 + $0x3c8] ss:$16 sps:$4 sm:$0xff]  }
  0x6d   :  { %1462 = vmatpush1.bf16.msra.mxu0 %v2249_v61 }
  0x6e   :  { %1463 = vmatprep.subr.bf16.mxu0 %v2254_v62 }
  0x6f   :  { %928 = vmatpush1.bf16.msra.mxu1 %v2156_v38  ;;  %v2331_v38 = vmov 1966171168  }
  0x70   :  { %929 = vmatprep.subr.bf16.mxu1 %v2161_v40  ;;  %v1006_v39 = vunpack.c.l.s4 %v2331_v38  ;;  %v1008_v40 = vlaneseq  ;;  %v2299_v38 = vld [vmem:[%s3067_s3 + $0x1a4] ss:$8 sps:$4 sm:$0xff]  }
  0x71   :  { %1464 = vmatpush1.bf16.msra.mxu0 %v2252_v1 }
  0x72   :  { %1465 = vmatprep.subr.bf16.mxu0 %v2257_v2  ;;  %v1007_v41 = vunpack.c.0.s8 %v1006_v39  ;;  %v2297_v39 = vld [vmem:[%s3067_s3 + $0x1a0] ss:$8 sps:$4 sm:$0xff]  }
  0x73   :  { %930 = vmatpush1.bf16.msra.mxu1 %v2159_v42  ;;  %v1009_v42 = vshrl.u32 %v1008_v40, 7  ;;  %v2302_v40 = vld [vmem:[%s3067_s3 + $0x1b4] ss:$8 sps:$4 sm:$0xff]  }
  0x74   :  { %931 = vmatprep.subr.bf16.mxu1 %v2164_v44 }
  0x75   :  { %1466 = vmatpush1.bf16.msra.mxu0 %v2255_v5  ;;  %v2883_v44 = vsub.s32 %v1007_v41, %v1009_v42  ;;  %v2332_v5 = vmov 0   ;;  %v2300_v41 = vld [vmem:[%s3067_s3 + $0x1b0] ss:$8 sps:$4 sm:$0xff]  }
  0x76   :  { %1467 = vmatprep.subr.bf16.mxu0 %v2260_v12  ;;  %v2275_v12 = vld [vmem:[%s3067_s3 + $0x124] ss:$8 sps:$4 sm:$0xff]  }
  0x77   :  { %932 = vmatpush1.bf16.msra.mxu1 %v2162_v46  ;;  %v2886_v46 = vrot.slane %v1893_v43, %v2883_v44  ;;  %v2889_v47 = vrot.slane %v1004_v45, %v2883_v44  ;;  %v2303_v43 = vld [vmem:[%s3067_s3 + $0x1c0] ss:$8 sps:$4 sm:$0xff]   ;;  %v2308_v45 = vld [vmem:[%s3067_s3 + $0x1d4] ss:$8 sps:$4 sm:$0xff]  }
  0x78   :  { %933 = vmatprep.subr.bf16.mxu1 %v2167_v48  ;;  %v2893_v48 = vsub.s32 0, %v1009_v42  ;;  %v2305_v42 = vld [vmem:[%s3067_s3 + $0x1c4] ss:$8 sps:$4 sm:$0xff]  }
  0x79   :  { %1468 = vmatpush1.bf16.msra.mxu0 %v2258_v13  ;;  %v1029_v52 = vpack.i.b16 %v2889_v47, %v2889_v47  ;;  %v2316_v13 = vld [vmem:[%s3069_s5] sm:$0xff]  }
  0x7a   :  { %1469 = vmatprep.subr.bf16.mxu0 %v2263_v16  ;;  %v2319_v16 = vld [vmem:[%s3069_s5 + $0x50] sm:$0xff]  }
  0x7b   :  { %934 = vmatpush1.bf16.msra.mxu1 %v2165_v50 }
  0x7c   :  { %935 = vmatprep.subr.bf16.mxu1 %v2170_v53 }
  0x7d   :  { %1470 = vmatpush1.bf16.msra.mxu0 %v2261_v17  ;;  %v2273_v17 = vld [vmem:[%s3067_s3 + $0x120] ss:$8 sps:$4 sm:$0xff]  }
  0x7e   :  { %1471 = vmatprep.subr.bf16.mxu0 %v2266_v20  ;;  %v2276_v20 = vld [vmem:[%s3067_s3 + $0x130] ss:$8 sps:$4 sm:$0xff]  }
  0x7f   :  { %936 = vmatpush1.bf16.msra.mxu1 %v2168_v55 }
  0x80   :  { %948 = vmatprep.subr.bf16.mxu1 %v2173_v57 }
  0x81   :  { %1472 = vmatpush1.bf16.msra.mxu0 %v2264_v21  ;;  %v2321_v21 = vld [vmem:[%s3069_s5 + $0x58] sm:$0xff]  }
  0x82   :  { %938 = vmatmul.mubr.bf16.vlgmr.msra.gmra.mrb[4].mxu1 %v2580_v3  ;;  %v2182_v3 = vld [vmem:[%s3065_s1 + $0x26c] ss:$16 sps:$4 sm:$0xff]   ;;  %1484 = vmatprep.subr.bf16.mxu0 %v2269_v24  ;;  %v2323_v24 = vld [vmem:[%s3069_s5 + $0x60] sm:$0xff]  }
  0x83   :  { %949 = vmatpush1.bf16.msra.mxu1 %v2171_v59  ;;  %980 = vmatprep.mubr.bf16.mxu1 %v2529_v51  ;;  %v2177_v51 = vld [vmem:[%s3065_s1 + $0x248] ss:$16 sps:$4 sm:$0xff]  }
  0x84   :  { %950 = vmatprep.subr.bf16.mxu1 %v2176_v60 }
  0x87   :  { %951 = vmatpush1.bf16.msra.mxu1 %v2174_v63 }
  0x88   :  { %952 = vmatprep.subr.bf16.mxu1 %v2179_v0  ;;  %v1034_v0 = vrot.slane %v1029_v52, %v2893_v48  ;;  %v2314_v52 = vld [vmem:[%s3067_s3 + $0x1f4] ss:$8 sps:$4 sm:$0xff]  }
  0x8b   :  { %953 = vmatpush1.bf16.msra.mxu1 %v2177_v51 }
  0x8c   :  { %954 = vmatprep.subr.bf16.mxu1 %v2182_v3 }
  0x8f   :  { %955 = vmatpush1.bf16.msra.mxu1 %v2180_v6 }
  0x90   :  { %956 = vmatprep.subr.bf16.mxu1 %v2185_v7  ;;  %v2267_v7 = vld [vmem:[%s3067_s3 + $0x100] ss:$8 sps:$4 sm:$0xff]  }
  0x93   :  { %957 = vmatpush1.bf16.msra.mxu1 %v2183_v8 }
  0x94   :  { %958 = vmatprep.subr.bf16.mxu1 %v2188_v9  ;;  %v2272_v9 = vld [vmem:[%s3067_s3 + $0x114] ss:$8 sps:$4 sm:$0xff]  }
  0x97   :  { %959 = vmatpush1.bf16.msra.mxu1 %v2186_v10  ;;  %v2270_v10 = vld [vmem:[%s3067_s3 + $0x110] ss:$8 sps:$4 sm:$0xff]  }
  0x98   :  { %960 = vmatprep.subr.bf16.mxu1 %v2191_v11  ;;  %v2315_v11 = vld [vmem:[%s3069_s5 + $0x40] sm:$0xff]  }
  0x9b   :  { %961 = vmatpush1.bf16.msra.mxu1 %v2189_v14  ;;  %v2317_v14 = vld [vmem:[%s3069_s5 + $0x48] sm:$0xff]  }
  0x9c   :  { %962 = vmatprep.subr.bf16.mxu1 %v2194_v15  ;;  %v2318_v15 = vld [vmem:[%s3069_s5 + $0x8] sm:$0xff]  }
  0x9f   :  { %963 = vmatpush1.bf16.msra.mxu1 %v2192_v18  ;;  %v2278_v18 = vld [vmem:[%s3067_s3 + $0x134] ss:$8 sps:$4 sm:$0xff]  }
  0xa0   :  { %964 = vmatprep.subr.bf16.mxu1 %v2197_v19  ;;  %v2320_v19 = vld [vmem:[%s3069_s5 + $0x10] sm:$0xff]  }
  0xa3   :  { %965 = vmatpush1.bf16.msra.mxu1 %v2195_v22  ;;  %v2281_v22 = vld [vmem:[%s3067_s3 + $0x144] ss:$8 sps:$4 sm:$0xff]  }
  0xa4   :  { %966 = vmatprep.subr.bf16.mxu1 %v2200_v23  ;;  %v2322_v23 = vld [vmem:[%s3069_s5 + $0x18] sm:$0xff]  }
  0xa7   :  { %967 = vmatpush1.bf16.msra.mxu1 %v2198_v25  ;;  %v2279_v25 = vld [vmem:[%s3067_s3 + $0x140] ss:$8 sps:$4 sm:$0xff]  }
  0xa8   :  { %968 = vmatprep.subr.bf16.mxu1 %v2203_v26  ;;  %v2284_v26 = vld [vmem:[%s3067_s3 + $0x154] ss:$8 sps:$4 sm:$0xff]  }
  0xab   :  { %969 = vmatpush1.bf16.msra.mxu1 %v2201_v27  ;;  %v2324_v27 = vld [vmem:[%s3069_s5 + $0x20] sm:$0xff]  }
  0xac   :  { %970 = vmatprep.subr.bf16.mxu1 %v2206_v28  ;;  %v2325_v28 = vld [vmem:[%s3069_s5 + $0x68] sm:$0xff]  }
  0xaf   :  { %971 = vmatpush1.bf16.msra.mxu1 %v2204_v29  ;;  %v2282_v29 = vld [vmem:[%s3067_s3 + $0x150] ss:$8 sps:$4 sm:$0xff]  }
  0xb0   :  { %972 = vmatprep.subr.bf16.mxu1 %v2209_v30  ;;  %v2287_v30 = vld [vmem:[%s3067_s3 + $0x164] ss:$8 sps:$4 sm:$0xff]  }
  0xb3   :  { %973 = vmatpush1.bf16.msra.mxu1 %v2207_v31  ;;  %v2285_v31 = vld [vmem:[%s3067_s3 + $0x160] ss:$8 sps:$4 sm:$0xff]  }
  0xb4   :  { %974 = vmatprep.subr.bf16.mxu1 %v2212_v32  ;;  %v2290_v32 = vld [vmem:[%s3067_s3 + $0x174] ss:$8 sps:$4 sm:$0xff]  }
  0xb7   :  { %975 = vmatpush1.bf16.msra.mxu1 %v2210_v33  ;;  %v2288_v33 = vld [vmem:[%s3067_s3 + $0x170] ss:$8 sps:$4 sm:$0xff]  }
  0xb8   :  { %976 = vmatprep.subr.bf16.mxu1 %v2215_v34  ;;  %v2293_v34 = vld [vmem:[%s3067_s3 + $0x184] ss:$8 sps:$4 sm:$0xff]  }
  0xbb   :  { %977 = vmatpush1.bf16.msra.mxu1 %v2213_v35  ;;  %v2291_v35 = vld [vmem:[%s3067_s3 + $0x180] ss:$8 sps:$4 sm:$0xff]  }
  0xbc   :  { %978 = vmatprep.subr.bf16.mxu1 %v2218_v36  ;;  %v2296_v36 = vld [vmem:[%s3067_s3 + $0x194] ss:$8 sps:$4 sm:$0xff]  }
  0xbf   :  { %979 = vmatpush1.bf16.msra.mxu1 %v2216_v37  ;;  %v2294_v37 = vld [vmem:[%s3067_s3 + $0x190] ss:$8 sps:$4 sm:$0xff]  }
  0xc0   :  { %1985 = vmatprep.subr.bf16.mxu1 %v2315_v11 }
  0xc2   :  { %981 = vmatmul.mubr.bf16.vlgmr.msra.gmra.mrb[4].mxu1 %v2585_v4  ;;  %v1022_v4 = vpack.i.b16 %v2886_v46, %v2886_v46 }
  0xc3   :  { %1986 = vmatpush3.bf16.msra.mxu1 %v2316_v13 }
  0xc4   :  { %v1027_v60 = vrot.slane %v1022_v4, %v2893_v48  ;;  %1987 = vmatprep.subr.bf16.mxu1 %v2317_v14  ;;  %v2306_v4 = vld [vmem:[%s3067_s3 + $0x1d0] ss:$8 sps:$4 sm:$0xff]  }
  0xc7   :  { %1988 = vmatpush3.bf16.msra.mxu1 %v2318_v15 }
  0xc8   :  { %1989 = vmatprep.subr.bf16.mxu1 %v2319_v16 }
  0xcb   :  { %1990 = vmatpush3.bf16.msra.mxu1 %v2320_v19 }
  0xcc   :  { %1991 = vmatprep.subr.bf16.mxu1 %v2321_v21 }
  0xcf   :  { %1992 = vmatpush3.bf16.msra.mxu1 %v2322_v23 }
  0xd0   :  { %1993 = vmatprep.subr.bf16.mxu1 %v2323_v24 }
  0xd3   :  { %1994 = vmatpush3.bf16.msra.mxu1 %v2324_v27 }
  0xd4   :  { %1995 = vmatprep.subr.bf16.mxu1 %v2325_v28 }
 0x115   :  { %v853_v49 = vpop.f32.mrb[0].mxu1 }
 0x116   :  { %v896_v50 = vpop.f32.mrb[0].mxu0  ;;  %v855_v54 = vpop.f32.mrb[1].mxu1 }
 0x117   :  { %v897_v53 = vadd.f32 %v896_v50, %v853_v49  ;;  %v898_v55 = vpop.f32.mrb[1].mxu0  ;;  %v857_v57 = vpop.f32.mrb[2].mxu1  ;;  %v2311_v49 = vld [vmem:[%s3067_s3 + $0x1e4] ss:$8 sps:$4 sm:$0xff]   ;;  %v2309_v50 = vld [vmem:[%s3067_s3 + $0x1e0] ss:$8 sps:$4 sm:$0xff]  }
 0x118   :  { %v899_v56 = vadd.f32 %v898_v55, %v855_v54  ;;  %v900_v58 = vpop.f32.mrb[2].mxu0  ;;  %v859_v61 = vpop.f32.mrb[3].mxu1  ;;  %v1019_v54 = vcombine.high %v2886_v46, %v2886_v46  ;;  %v1020_v55 = vcombine.high %v2889_v47, %v2889_v47  ;;  %v2326_v47 = vld [vmem:[%s3069_s5 + $0x28] sm:$0xff]  }
 0x119   :  { %v901_v59 = vadd.f32 %v900_v58, %v857_v57  ;;  %v902_v62 = vpop.f32.mrb[3].mxu0  ;;  %1996 = vmatpush3.bf16.msra.mxu1 %v2326_v47 }
 0x11a   :  { %v903_v63 = vadd.f32 %v902_v62, %v859_v61  ;;  %v1043_v57 = vpack.i.b16 %v1020_v55, %v1020_v55 }
 0x11b   :  { %v991_v1 = vpack.c.bf16 %v901_v59, %v897_v53  ;;  %v2312_v53 = vld [vmem:[%s3067_s3 + $0x1f0] ss:$8 sps:$4 sm:$0xff]  }
 0x11c   :  { %v992_v2 = vpack.c.bf16 %v903_v63, %v899_v56  ;;  %v1036_v56 = vpack.i.b16 %v1019_v54, %v1019_v54  ;;  %v1048_v62 = vrot.slane %v1043_v57, %v2893_v48 }
 0x11d   :  { %v1049_v51 = vadd.bf16 %v1027_v60, %v991_v1 }
 0x11e   :  { %v1050_v3 = vadd.bf16 %v1034_v0, %v992_v2  ;;  %v1041_v60 = vrot.slane %v1036_v56, %v2893_v48 }
 0x11f   :  { %v1053_v8 = vmax.bf16 %v2332_v5, %v1049_v51 }
 0x120   :  { %v1054_v6 = vmax.bf16 %v2332_v5, %v1050_v3 }
 0x122   :  { %1473 = vmatprep.mubr.bf16.mxu0 %v1054_v6  ;;  %v2327_v6 = vld [vmem:[%s3069_s5 + $0x70] sm:$0xff]  }
 0x123   :  { %1474 = vmatmul.mubr.bf16.vlgmr.msra.gmra.mrb[4].mxu0 %v1053_v8  ;;  %1997 = vmatprep.subr.bf16.mxu1 %v2327_v6  ;;  %v2329_v8 = vld [vmem:[%s3069_s5 + $0x78] sm:$0xff]  }
 0x124   :  { %1485 = vmatpush1.bf16.msra.mxu0 %v2267_v7  ;;  %v2328_v7 = vld [vmem:[%s3069_s5 + $0x30] sm:$0xff]  }
 0x125   :  { %1486 = vmatprep.subr.bf16.mxu0 %v2272_v9  ;;  %1998 = vmatpush3.bf16.msra.mxu1 %v2328_v7  ;;  %v2330_v9 = vld [vmem:[%s3069_s5 + $0x38] sm:$0xff]  }
 0x126   :  { %1999 = vmatprep.subr.bf16.mxu1 %v2329_v8 }
 0x128   :  { %1487 = vmatpush1.bf16.msra.mxu0 %v2270_v10  ;;  %v1958_v10 = vld.sshfl [vmem:[%s3070_s4] sm:$0x11 pattern:$0x75316420] }
 0x129   :  { %1488 = vmatprep.subr.bf16.mxu0 %v2275_v12  ;;  %2000 = vmatpush3.bf16.msra.mxu1 %v2330_v9  ;;  %v1538_v11 = vcombine.high %v1958_v10, %v1958_v10  ;;  %v1545_v12 = vrot.slane %v1958_v10, %v2883_v44 }
 0x12b   :  { %v1552_v13 = vrot.slane %v1538_v11, %v2883_v44  ;;  %v1554_v14 = vpack.i.b16 %v1545_v12, %v1545_v12 }
 0x12c   :  { %1489 = vmatpush1.bf16.msra.mxu0 %v2273_v17 }
 0x12d   :  { %1490 = vmatprep.subr.bf16.mxu0 %v2278_v18  ;;  %v1561_v15 = vpack.i.b16 %v1552_v13, %v1552_v13  ;;  %v1559_v18 = vrot.slane %v1554_v14, %v2893_v48 }
 0x130   :  { %1491 = vmatpush1.bf16.msra.mxu0 %v2276_v20  ;;  %v1566_v20 = vrot.slane %v1561_v15, %v2893_v48 }
 0x131   :  { %1492 = vmatprep.subr.bf16.mxu0 %v2281_v22 }
 0x134   :  { %1493 = vmatpush1.bf16.msra.mxu0 %v2279_v25 }
 0x135   :  { %1494 = vmatprep.subr.bf16.mxu0 %v2284_v26 }
 0x138   :  { %1495 = vmatpush1.bf16.msra.mxu0 %v2282_v29 }
 0x139   :  { %1496 = vmatprep.subr.bf16.mxu0 %v2287_v30 }
 0x13c   :  { %1497 = vmatpush1.bf16.msra.mxu0 %v2285_v31  ;;  %v1959_v31 = vld [vmem:[%s3071_s6] ss:$0 sm:$0xff] }
 0x13d   :  { %1498 = vmatprep.subr.bf16.mxu0 %v2290_v32 }
 0x140   :  { %1499 = vmatpush1.bf16.msra.mxu0 %v2288_v33 }
 0x141   :  { %1500 = vmatprep.subr.bf16.mxu0 %v2293_v34 }
 0x144   :  { %1501 = vmatpush1.bf16.msra.mxu0 %v2291_v35 }
 0x145   :  { %1502 = vmatprep.subr.bf16.mxu0 %v2296_v36 }
 0x148   :  { %1503 = vmatpush1.bf16.msra.mxu0 %v2294_v37 }
 0x149   :  { %1504 = vmatprep.subr.bf16.mxu0 %v2299_v38 }
 0x14c   :  { %1505 = vmatpush1.bf16.msra.mxu0 %v2297_v39 }
 0x14d   :  { %1506 = vmatprep.subr.bf16.mxu0 %v2302_v40 }
 0x150   :  { %1507 = vmatpush1.bf16.msra.mxu0 %v2300_v41 }
 0x151   :  { %1508 = vmatprep.subr.bf16.mxu0 %v2305_v42 }
 0x154   :  { %1509 = vmatpush1.bf16.msra.mxu0 %v2303_v43 }
 0x155   :  { %1510 = vmatprep.subr.bf16.mxu0 %v2308_v45 }
 0x158   :  { %1511 = vmatpush1.bf16.msra.mxu0 %v2306_v4 }
 0x159   :  { %1512 = vmatprep.subr.bf16.mxu0 %v2311_v49 }
 0x15c   :  { %1513 = vmatpush1.bf16.msra.mxu0 %v2309_v50 }
 0x15d   :  { %1514 = vmatprep.subr.bf16.mxu0 %v2314_v52 }
 0x160   :  { %1515 = vmatpush1.bf16.msra.mxu0 %v2312_v53 }
 0x195   :  { %v982_v58 = vpop.f32.mrb[4].mxu1 }
 0x196   :  { %v984_v59 = vpop.f32.mrb[5].mxu1 }
 0x197   :  { %v986_v61 = vpop.f32.mrb[6].mxu1 }
 0x198   :  { %v993_v63 = vpack.c.bf16 %v986_v61, %v982_v58  ;;  %v988_v0 = vpop.f32.mrb[7].mxu1 }
 0x199   :  { %v994_v1 = vpack.c.bf16 %v988_v0, %v984_v59 }
 0x19a   :  { %v1051_v2 = vadd.bf16 %v1041_v60, %v993_v63 }
 0x19b   :  { %v1052_v51 = vadd.bf16 %v1048_v62, %v994_v1 }
 0x19c   :  { %v1055_v46 = vmax.bf16 %v2332_v5, %v1051_v2 }
 0x19d   :  { %v1056_v3 = vmax.bf16 %v2332_v5, %v1052_v51 }
 0x19f   :  { %1516 = vmatprep.mubr.bf16.mxu0 %v1056_v3 }
 0x1a0   :  { %1517 = vmatmul.mubr.bf16.vlgmr.msra.gmra.mrb[4].mxu0 %v1055_v46 }
 0x273   :  { %v1518_v16 = vpop.f32.mrb[4].mxu0 }
 0x274   :  { %v1520_v17 = vpop.f32.mrb[5].mxu0 }
 0x275   :  { %v1522_v19 = vpop.f32.mrb[6].mxu0 }
 0x276   :  { %v1527_v21 = vpack.c.bf16 %v1522_v19, %v1518_v16  ;;  %v1524_v22 = vpop.f32.mrb[7].mxu0 }
 0x277   :  { %v1528_v23 = vpack.c.bf16 %v1524_v22, %v1520_v17 }
 0x278   :  { %v1567_v24 = vadd.bf16 %v1559_v18, %v1527_v21 }
 0x279   :  { %v1568_v25 = vadd.bf16 %v1566_v20, %v1528_v23 }
 0x27a   :  { %v1569_v27 = vmax.bf16 %v2332_v5, %v1567_v24 }
 0x27b   :  { %v1570_v26 = vmax.bf16 %v2332_v5, %v1568_v25 }
 0x27d   :  { %1738 = vmatprep.mubr.bf16.mxu1 %v1570_v26 }
 0x27e   :  { %1739 = vmatmul.mubr.bf16.vlgmr.msra.gmra.mrb[8].mxu1 %v1569_v27 }
 0x351   :  { %v2001_v44 = vpop.f32.mrb[8].mxu1 }
 0x352   :  { %v2002_v28 = vpop.f32.mrb[9].mxu1 }
 0x353   :  { %v2003_v29 = vadd.f32 %v2002_v28, %v2001_v44  ;;  %v2004_v30 = vpop.f32.mrb[10].mxu1 }
 0x354   :  { %v2005_v48 = vpop.f32.mrb[11].mxu1 }
 0x355   :  { %v2006_v32 = vadd.f32 %v2005_v48, %v2004_v30  ;;  %v1741_v33 = vadd.f32 %v2003_v29, %v1959_v31 }
 0x357   :  { %v1744_v34 = vadd.f32 %v2006_v32, %v1959_v31 }
 0x359   :  { %v1983_v35 = vpack.c.bf16 %v1744_v34, %v1741_v33 }
 0x35b   :  { %1984 = vst [vmem:[%s3072_s7] sm:$0xff] %v1983_v35  }

</bundles_post_ra>
